<compile_context>
chip_gen: v5e
topology: v5e:2x2
jax: 0.10.0
libtpu: 0.0.40
codegen_flags: <defaults>
</compile_context>

<pallas_src>
import jax
import jax.numpy as jnp
from jax.experimental import pallas as pl
from jax.experimental.pallas import tpu as pltpu


def _round_up(x, m):
    return (x + m - 1) // m * m


def dp_net_kernel(x_ref, w1_ref, b1_ref, w2_ref, b2_ref, o_ref):
    # Encoder: Linear -> ReLU   (dropout is identity at inference).
    x = x_ref[...].astype(jnp.bfloat16)            # in-kernel cast (free VPU op)
    h = jnp.dot(x, w1_ref[...], preferred_element_type=jnp.float32)
    h = jnp.maximum(h + b1_ref[...], 0.0)
    # Classifier: Linear.  (h re-quantized to bf16 for the MXU; f32 accum.)
    logits = jnp.dot(h.astype(jnp.bfloat16), w2_ref[...],
                     preferred_element_type=jnp.float32)
    o_ref[...] = (logits + b2_ref[...]).astype(o_ref.dtype)


def prepare_dp_net_params(w1, b1, w2, b2):
    """One-time conversion of the static parameters: bf16 MXU weights and 2-D
    f32 biases.  Call once and reuse across forward calls (avoids a per-call
    HBM pass over the weights)."""
    return (w1.astype(jnp.bfloat16),
            jnp.asarray(b1, jnp.float32).reshape(1, -1),
            w2.astype(jnp.bfloat16),
            jnp.asarray(b2, jnp.float32).reshape(1, -1))


def _make_forward(Bp, In, H, C, tile_b, vmem_limit_bytes, single_buffer_weights):
    """Builds the pallas_call for a (padded) batch Bp tiled by tile_b rows."""
    resident = ({"pipeline_mode": pl.Buffered(1)}
                if single_buffer_weights else {})
    grid = (Bp // tile_b,)
    cost = pl.CostEstimate(
        flops=2 * Bp * (In * H + H * C),
        transcendentals=0,
        bytes_accessed=(Bp * In * 4 + In * H * 2 + H * 4
                        + H * C * 2 + C * 4 + Bp * C * 4),
    )
    return pl.pallas_call(
        dp_net_kernel,
        out_shape=jax.ShapeDtypeStruct((Bp, C), jnp.float32),
        grid_spec=pltpu.PrefetchScalarGridSpec(
            num_scalar_prefetch=0,
            grid=grid,
            in_specs=[
                pl.BlockSpec((tile_b, In), lambda i: (i, 0)),           # x (f32)
                pl.BlockSpec((In, H), lambda i: (0, 0), **resident),    # w1 bf16
                pl.BlockSpec((1, H), lambda i: (0, 0), **resident),     # b1 f32
                pl.BlockSpec((H, C), lambda i: (0, 0), **resident),     # w2 bf16
                pl.BlockSpec((1, C), lambda i: (0, 0), **resident),     # b2 f32
            ],
            out_specs=pl.BlockSpec((tile_b, C), lambda i: (i, 0)),
        ),
        compiler_params=pltpu.CompilerParams(
            dimension_semantics=("parallel",),
            vmem_limit_bytes=vmem_limit_bytes,
        ),
        cost_estimate=cost,
    )


def dp_net_forward(x, params, *, tile_b=512):
    """x: (B, In) f32; params: output of prepare_dp_net_params()."""
    w1, b1, w2, b2 = params
    B, In = x.shape
    H = w1.shape[1]
    C = w2.shape[1]

    # Batch tile: a single block for small B (grid=(1,), no per-step pipeline
    # overhead), otherwise a large MXU-aligned tile (multiples of 256 fill the
    # 256-wide v6e/v7x MXU and are also multiples of 128 for v5e).  Grid
    # length >= 2 then lets the "parallel" axis shard across v7x's two TCs.
    if B <= tile_b:
        tb = _round_up(B, 8)                       # single block
    else:
        tb = _round_up(tile_b, 256)
    Bp = _round_up(B, tb)
    x_in = x if Bp == B else jnp.pad(x, ((0, Bp - B), (0, 0)))

    # Explicit VMEM budget: resident weights (ideally single-buffered) plus
    # double-buffered x / out blocks, with generous headroom.  >=32 MiB so
    # v5e's 16 MiB default never caps the tile; <=56 MiB to fit v7x's 64 MiB.
    resident_bytes = w1.size * 2 + b1.size * 4 + w2.size * 2 + b2.size * 4
    block_bytes = 2 * (tb * In * 4 + tb * C * 4)
    vmem_limit = int(min(56 << 20,
                         max(32 << 20, 4 * (resident_bytes + block_bytes))))

    call_args = (x_in, w1, b1, w2, b2)
    try:
        out = _make_forward(Bp, In, H, C, tb, vmem_limit, True)(*call_args)
    except Exception:
        # pl.Buffered(1) not accepted by this build -> default double buffering.
        out = _make_forward(Bp, In, H, C, tb, vmem_limit, False)(*call_args)

    return out if Bp == B else out[:B]


def dp_net_reference(x, w1, b1, w2, b2):
    h = jnp.maximum(x @ w1 + b1, 0.0)
    return h @ w2 + b2


if __name__ == "__main__":
    # Small shapes consistent with the module's forward:
    #   batch=16, input_size=32, hidden_size=128, classes_number=4
    batch, input_size, hidden_size, classes_number = 16, 32, 128, 4

    key = jax.random.PRNGKey(0)
    kx, kw1, kb1, kw2, kb2 = jax.random.split(key, 5)

    x = jax.random.normal(kx, (batch, input_size), dtype=jnp.float32)
    w1 = jax.random.normal(kw1, (input_size, hidden_size), dtype=jnp.float32) * 0.1
    b1 = jax.random.normal(kb1, (1, hidden_size), dtype=jnp.float32) * 0.1
    w2 = jax.random.normal(kw2, (hidden_size, classes_number), dtype=jnp.float32) * 0.1
    b2 = jax.random.normal(kb2, (1, classes_number), dtype=jnp.float32) * 0.1

    # Static params converted once, outside the per-call wrapper.
    params = prepare_dp_net_params(w1, b1, w2, b2)

    # B=16 -> single block, grid=(1,): no batch padding, no pipeline overhead.
    out = dp_net_forward(x, params)
    out = jax.block_until_ready(out)

    ref = dp_net_reference(x, w1, b1, w2, b2)
    assert out.shape == (batch, classes_number)
    # bf16 MXU inputs with f32 accumulation -> relaxed tolerance vs f32 ref.
    assert jnp.allclose(out, ref, atol=5e-2, rtol=5e-2), (
        float(jnp.max(jnp.abs(out - ref))))

    print("KERNEL_OK")
</pallas_src>

<mosaic_0001>
module attributes {stable_mosaic.version = 11 : i64} {
  func.func @dp_net_kernel(%arg0: i32, %arg1: memref<16x32xf32, #tpu.memory_space<vmem>>, %arg2: memref<32x128xbf16, #tpu.memory_space<vmem>>, %arg3: memref<1x128xf32, #tpu.memory_space<vmem>>, %arg4: memref<128x4xbf16, #tpu.memory_space<vmem>>, %arg5: memref<1x4xf32, #tpu.memory_space<vmem>>, %arg6: memref<16x4xf32, #tpu.memory_space<vmem>>) attributes {dimension_semantics = [#tpu.dimension_semantics<parallel>], iteration_bounds = array<i64: 1>, scalar_prefetch = 0 : i64, scratch_operands = 0 : i64, tpu.core_type = #tpu.core_type<tc>, window_params = [{transform_indices = @transform_0, window_bounds = array<i64: 16, 32>}, {pipeline_mode = #tpu.pipeline_mode<synchronous>, transform_indices = @transform_1, window_bounds = array<i64: 32, 128>}, {pipeline_mode = #tpu.pipeline_mode<synchronous>, transform_indices = @transform_2, window_bounds = array<i64: 1, 128>}, {pipeline_mode = #tpu.pipeline_mode<synchronous>, transform_indices = @transform_3, window_bounds = array<i64: 128, 4>}, {pipeline_mode = #tpu.pipeline_mode<synchronous>, transform_indices = @transform_4, window_bounds = array<i64: 1, 4>}, {transform_indices = @transform_5, window_bounds = array<i64: 16, 4>}]} {
    %c0 = arith.constant 0 : index
    %c0_0 = arith.constant 0 : index
    %0 = vector.load %arg1[%c0, %c0_0] : memref<16x32xf32, #tpu.memory_space<vmem>>, vector<16x32xf32>
    %1 = arith.truncf %0 : vector<16x32xf32> to vector<16x32xbf16>
    %c0_1 = arith.constant 0 : index
    %c0_2 = arith.constant 0 : index
    %2 = vector.load %arg2[%c0_1, %c0_2] : memref<32x128xbf16, #tpu.memory_space<vmem>>, vector<32x128xbf16>
    %cst = arith.constant dense<0.000000e+00> : vector<16x128xf32>
    %3 = tpu.matmul %1, %2, %cst {dimension_numbers = #tpu.dot_dimension_numbers<[1], [0], [0], [1], [0, 0, 1, 1], [], []>} : vector<16x32xbf16>, vector<32x128xbf16>, vector<16x128xf32> -> vector<16x128xf32>
    %c0_3 = arith.constant 0 : index
    %c0_4 = arith.constant 0 : index
    %4 = vector.load %arg3[%c0_3, %c0_4] : memref<1x128xf32, #tpu.memory_space<vmem>>, vector<1x128xf32>
    %5 = vector.broadcast %4 : vector<1x128xf32> to vector<16x128xf32>
    %6 = arith.addf %3, %5 : vector<16x128xf32>
    %cst_5 = arith.constant 0.000000e+00 : f32
    %7 = vector.broadcast %cst_5 : f32 to vector<16x128xf32>
    %8 = arith.maximumf %6, %7 : vector<16x128xf32>
    %9 = arith.truncf %8 : vector<16x128xf32> to vector<16x128xbf16>
    %c0_6 = arith.constant 0 : index
    %c0_7 = arith.constant 0 : index
    %10 = vector.load %arg4[%c0_6, %c0_7] : memref<128x4xbf16, #tpu.memory_space<vmem>>, vector<128x4xbf16>
    %cst_8 = arith.constant dense<0.000000e+00> : vector<16x4xf32>
    %11 = tpu.matmul %9, %10, %cst_8 {dimension_numbers = #tpu.dot_dimension_numbers<[1], [0], [0], [1], [0, 0, 1, 1], [], []>} : vector<16x128xbf16>, vector<128x4xbf16>, vector<16x4xf32> -> vector<16x4xf32>
    %c0_9 = arith.constant 0 : index
    %c0_10 = arith.constant 0 : index
    %12 = vector.load %arg5[%c0_9, %c0_10] : memref<1x4xf32, #tpu.memory_space<vmem>>, vector<1x4xf32>
    %13 = vector.broadcast %12 : vector<1x4xf32> to vector<16x4xf32>
    %14 = arith.addf %11, %13 : vector<16x4xf32>
    %c0_11 = arith.constant 0 : index
    %c0_12 = arith.constant 0 : index
    %15 = vector.load %arg6[%c0_11, %c0_12] : memref<16x4xf32, #tpu.memory_space<vmem>>, vector<16x4xf32>
    tpu.vector_store %arg6[%c0_11, %c0_12], %14 {strides = array<i32>} : memref<16x4xf32, #tpu.memory_space<vmem>>, vector<16x4xf32>,
    return
  }
  func.func @transform_0(%arg0: i32) -> (i32, i32) {
    %c0_i32 = arith.constant 0 : i32
    %c0_i32_0 = arith.constant 0 : i32
    return %arg0, %c0_i32 : i32, i32
  }
  func.func @transform_1(%arg0: i32) -> (i32, i32) {
    %c0_i32 = arith.constant 0 : i32
    %c0_i32_0 = arith.constant 0 : i32
    %c0_i32_1 = arith.constant 0 : i32
    return %c0_i32, %c0_i32_0 : i32, i32
  }
  func.func @transform_2(%arg0: i32) -> (i32, i32) {
    %c0_i32 = arith.constant 0 : i32
    %c0_i32_0 = arith.constant 0 : i32
    %c0_i32_1 = arith.constant 0 : i32
    return %c0_i32, %c0_i32_0 : i32, i32
  }
  func.func @transform_3(%arg0: i32) -> (i32, i32) {
    %c0_i32 = arith.constant 0 : i32
    %c0_i32_0 = arith.constant 0 : i32
    %c0_i32_1 = arith.constant 0 : i32
    return %c0_i32, %c0_i32_0 : i32, i32
  }
  func.func @transform_4(%arg0: i32) -> (i32, i32) {
    %c0_i32 = arith.constant 0 : i32
    %c0_i32_0 = arith.constant 0 : i32
    %c0_i32_1 = arith.constant 0 : i32
    return %c0_i32, %c0_i32_0 : i32, i32
  }
  func.func @transform_5(%arg0: i32) -> (i32, i32) {
    %c0_i32 = arith.constant 0 : i32
    %c0_i32_0 = arith.constant 0 : i32
    return %arg0, %c0_i32 : i32, i32
  }
}

module attributes {stable_mosaic.version = 11 : i64} {
  func.func @dp_net_kernel(%arg0: i32, %arg1: memref<16x32xf32, #tpu.memory_space<vmem>>, %arg2: memref<32x128xbf16, #tpu.memory_space<vmem>>, %arg3: memref<1x128xf32, #tpu.memory_space<vmem>>, %arg4: memref<128x4xbf16, #tpu.memory_space<vmem>>, %arg5: memref<1x4xf32, #tpu.memory_space<vmem>>, %arg6: memref<16x4xf32, #tpu.memory_space<vmem>>) attributes {dimension_semantics = [#tpu.dimension_semantics<parallel>], iteration_bounds = array<i64: 1>, scalar_prefetch = 0 : i64, scratch_operands = 0 : i64, tpu.core_type = #tpu.core_type<tc>, window_params = [{transform_indices = @transform_0, window_bounds = array<i64: 16, 32>}, {pipeline_mode = #tpu.pipeline_mode<synchronous>, transform_indices = @transform_1, window_bounds = array<i64: 32, 128>}, {pipeline_mode = #tpu.pipeline_mode<synchronous>, transform_indices = @transform_2, window_bounds = array<i64: 1, 128>}, {pipeline_mode = #tpu.pipeline_mode<synchronous>, transform_indices = @transform_3, window_bounds = array<i64: 128, 4>}, {pipeline_mode = #tpu.pipeline_mode<synchronous>, transform_indices = @transform_4, window_bounds = array<i64: 1, 4>}, {transform_indices = @transform_5, window_bounds = array<i64: 16, 4>}]} {
    %c0 = arith.constant 0 : index
    %c0_0 = arith.constant 0 : index
    %0 = vector.load %arg1[%c0, %c0_0] : memref<16x32xf32, #tpu.memory_space<vmem>>, vector<16x32xf32>
    %1 = arith.truncf %0 : vector<16x32xf32> to vector<16x32xbf16>
    %c0_1 = arith.constant 0 : index
    %c0_2 = arith.constant 0 : index
    %2 = vector.load %arg2[%c0_1, %c0_2] : memref<32x128xbf16, #tpu.memory_space<vmem>>, vector<32x128xbf16>
    %cst = arith.constant dense<0.000000e+00> : vector<16x128xf32>
    %3 = tpu.matmul %1, %2, %cst {dimension_numbers = #tpu.dot_dimension_numbers<[1], [0], [0], [1], [0, 0, 1, 1], [], []>} : vector<16x32xbf16>, vector<32x128xbf16>, vector<16x128xf32> -> vector<16x128xf32>
    %c0_3 = arith.constant 0 : index
    %c0_4 = arith.constant 0 : index
    %4 = vector.load %arg3[%c0_3, %c0_4] : memref<1x128xf32, #tpu.memory_space<vmem>>, vector<1x128xf32>
    %5 = vector.broadcast %4 : vector<1x128xf32> to vector<16x128xf32>
    %6 = arith.addf %3, %5 : vector<16x128xf32>
    %cst_5 = arith.constant 0.000000e+00 : f32
    %7 = vector.broadcast %cst_5 : f32 to vector<16x128xf32>
    %8 = arith.maximumf %6, %7 : vector<16x128xf32>
    %9 = arith.truncf %8 : vector<16x128xf32> to vector<16x128xbf16>
    %c0_6 = arith.constant 0 : index
    %c0_7 = arith.constant 0 : index
    %10 = vector.load %arg4[%c0_6, %c0_7] : memref<128x4xbf16, #tpu.memory_space<vmem>>, vector<128x4xbf16>
    %cst_8 = arith.constant dense<0.000000e+00> : vector<16x4xf32>
    %11 = tpu.matmul %9, %10, %cst_8 {dimension_numbers = #tpu.dot_dimension_numbers<[1], [0], [0], [1], [0, 0, 1, 1], [], []>} : vector<16x128xbf16>, vector<128x4xbf16>, vector<16x4xf32> -> vector<16x4xf32>
    %c0_9 = arith.constant 0 : index
    %c0_10 = arith.constant 0 : index
    %12 = vector.load %arg5[%c0_9, %c0_10] : memref<1x4xf32, #tpu.memory_space<vmem>>, vector<1x4xf32>
    %13 = vector.broadcast %12 : vector<1x4xf32> to vector<16x4xf32>
    %14 = arith.addf %11, %13 : vector<16x4xf32>
    %c0_11 = arith.constant 0 : index
    %c0_12 = arith.constant 0 : index
    %15 = vector.load %arg6[%c0_11, %c0_12] : memref<16x4xf32, #tpu.memory_space<vmem>>, vector<16x4xf32>
    tpu.vector_store %arg6[%c0_11, %c0_12], %14 {strides = array<i32>} : memref<16x4xf32, #tpu.memory_space<vmem>>, vector<16x4xf32>,
    return
  }
  func.func @transform_0(%arg0: i32) -> (i32, i32) {
    %c0_i32 = arith.constant 0 : i32
    %c0_i32_0 = arith.constant 0 : i32
    return %arg0, %c0_i32 : i32, i32
  }
  func.func @transform_1(%arg0: i32) -> (i32, i32) {
    %c0_i32 = arith.constant 0 : i32
    %c0_i32_0 = arith.constant 0 : i32
    %c0_i32_1 = arith.constant 0 : i32
    return %c0_i32, %c0_i32_0 : i32, i32
  }
  func.func @transform_2(%arg0: i32) -> (i32, i32) {
    %c0_i32 = arith.constant 0 : i32
    %c0_i32_0 = arith.constant 0 : i32
    %c0_i32_1 = arith.constant 0 : i32
    return %c0_i32, %c0_i32_0 : i32, i32
  }
  func.func @transform_3(%arg0: i32) -> (i32, i32) {
    %c0_i32 = arith.constant 0 : i32
    %c0_i32_0 = arith.constant 0 : i32
    %c0_i32_1 = arith.constant 0 : i32
    return %c0_i32, %c0_i32_0 : i32, i32
  }
  func.func @transform_4(%arg0: i32) -> (i32, i32) {
    %c0_i32 = arith.constant 0 : i32
    %c0_i32_0 = arith.constant 0 : i32
    %c0_i32_1 = arith.constant 0 : i32
    return %c0_i32, %c0_i32_0 : i32, i32
  }
  func.func @transform_5(%arg0: i32) -> (i32, i32) {
    %c0_i32 = arith.constant 0 : i32
    %c0_i32_0 = arith.constant 0 : i32
    return %arg0, %c0_i32 : i32, i32
  }
}

</mosaic_0001>

<bundles_post_ra>
// kernel: tpu_custom_call.1
= control target key start
LH: loop header
LB: loop body
LE: loop exit
PB: predicated region body
PF: predicated region fallthrough
CT: control target
= control target key end

     0   :  { %vm44_vm0 = vcmask 261120   ;;  %vm147_vm1 = vcmask 31744   ;;  %s285_s1 = inlined_call_operand.vmem [shape: bf16[32,128], index: 1, kind: input, shape index: {}]   ;;  %s286_s0 = inlined_call_operand.vmem [shape: f32[16,32], index: 0, kind: input, shape index: {}]   ;;  %s287_s3 = inlined_call_operand.vmem [shape: bf16[128,4], index: 3, kind: input, shape index: {}]   ;;  %s288_s2 = inlined_call_operand.vmem [shape: f32[1,128], index: 2, kind: input, shape index: {}]   ;;  %s289_s4 = inlined_call_operand.vmem [shape: f32[1,4], index: 4, kind: input, shape index: {}]   ;;  %s290_s5 = inlined_call_operand.vmem [shape: f32[16,4], index: 5, kind: output, shape index: {}]  }
   0x1   :  { %v196_v0 = vld [vmem:[%s285_s1 + $0x8] sm:$0xff]  ;;  %v195_v1 = vld [vmem:[%s285_s1] sm:$0xff]  ;;  %v204_v2 = vld [vmem:[%s287_s3 + $0x38] sm:$0xff] }
   0x2   :  { %54 = vmatpush.bf16.msra.mxu0 %v196_v0  ;;  %v21_v3 = vld [vmem:[%s286_s0] sm:$0xff]  ;;  %v22_v4 = vld [vmem:[%s286_s0 + $0x8] sm:$0xff]  ;;  %133 = vmatpush.bf16.msra.mxu1 %v204_v2  ;;  %v203_v5 = vld [vmem:[%s287_s3 + $0x30] sm:$0xff] }
   0x3   :  { %v23_v6 = vpack.c.bf16 %v22_v4, %v21_v3  ;;  %v202_v7 = vld [vmem:[%s287_s3 + $0x28] sm:$0xff]  ;;  %v201_v8 = vld [vmem:[%s287_s3 + $0x20] sm:$0xff]  ;;  %v200_v9 = vld [vmem:[%s287_s3 + $0x18] sm:$0xff] }
   0x4   :  { %v199_v10 = vld [vmem:[%s287_s3 + $0x10] sm:$0xff]  ;;  %v198_v11 = vld [vmem:[%s287_s3 + $0x8] sm:$0xff]  ;;  %v197_v12 = vld [vmem:[%s287_s3] sm:$0xff] }
   0x5   :  { %v205_v14 = vld [vmem:[%s288_s2] ss:$0 sm:$0xff] }
   0x6   :  { %55 = vmatpush.bf16.msra.mxu0 %v195_v1  ;;  %134 = vmatpush.bf16.msra.mxu1 %v203_v5  ;;  %v206_v21 = vld [vmem:[%s289_s4] ss:$0 sm:$0xff] }
   0x9   :  { %162 = vmatmul.msk.bf16.vlgmr.msra.gmra.mxu0 %vm44_vm0, %v23_v6 }
   0xa   :  { %135 = vmatpush.bf16.msra.mxu1 %v202_v7 }
   0xe   :  { %136 = vmatpush.bf16.msra.mxu1 %v201_v8 }
  0x12   :  { %137 = vmatpush.bf16.msra.mxu1 %v200_v9 }
  0x16   :  { %138 = vmatpush.bf16.msra.mxu1 %v199_v10 }
  0x1a   :  { %139 = vmatpush.bf16.msra.mxu1 %v198_v11 }
  0x1e   :  { %140 = vmatpush.bf16.msra.mxu1 %v197_v12 }
  0x86   :  { %v57_v13 = vpop.f32.mrf.mxu0 }
  0x87   :  { %v58_v15 = vadd.f32 %v205_v14, %v57_v13 }
  0x89   :  { %v62_v18 = vmax.f32 %v58_v15, 0.0 }
  0x8e   :  { %v59_v16 = vpop.f32.mrf.mxu0 }
  0x8f   :  { %v60_v17 = vadd.f32 %v205_v14, %v59_v16 }
  0x91   :  { %v63_v19 = vmax.f32 %v60_v17, 0.0 }
  0x93   :  { %v64_v20 = vpack.c.bf16 %v63_v19, %v62_v18 }
  0x95   :  { %141 = vmatmul.bf16.vlgmr.msra.gmra.mxu1 %v64_v20 }
 0x112   :  { %v142_v22 = vpop.f32.mrf.mxu1 }
 0x113   :  { %v143_v23 = vadd.f32 %v206_v21, %v142_v22 }
 0x115   :  { %148 = vst.msk [vmem:[%s290_s5] sm:$0xff] %vm147_vm1, %v143_v23 }
 0x11a   :  { %v144_v24 = vpop.f32.mrf.mxu1 }
 0x11b   :  { %v145_v25 = vadd.f32 %v206_v21, %v144_v24 }
 0x11d   :  { %149 = vst.msk [vmem:[%s290_s5 + $0x8] sm:$0xff] %vm147_vm1, %v145_v25 }

// kernel: tpu_custom_call.1
= control target key start
LH: loop header
LB: loop body
LE: loop exit
PB: predicated region body
PF: predicated region fallthrough
CT: control target
= control target key end

     0   :  { %vm44_vm0 = vcmask 261120   ;;  %vm147_vm1 = vcmask 31744   ;;  %s285_s1 = inlined_call_operand.vmem [shape: bf16[32,128], index: 1, kind: input, shape index: {}]   ;;  %s286_s0 = inlined_call_operand.vmem [shape: f32[16,32], index: 0, kind: input, shape index: {}]   ;;  %s287_s3 = inlined_call_operand.vmem [shape: bf16[128,4], index: 3, kind: input, shape index: {}]   ;;  %s288_s2 = inlined_call_operand.vmem [shape: f32[1,128], index: 2, kind: input, shape index: {}]   ;;  %s289_s4 = inlined_call_operand.vmem [shape: f32[1,4], index: 4, kind: input, shape index: {}]   ;;  %s290_s5 = inlined_call_operand.vmem [shape: f32[16,4], index: 5, kind: output, shape index: {}]  }
   0x1   :  { %v196_v0 = vld [vmem:[%s285_s1 + $0x8] sm:$0xff]  ;;  %v195_v1 = vld [vmem:[%s285_s1] sm:$0xff]  ;;  %v204_v2 = vld [vmem:[%s287_s3 + $0x38] sm:$0xff] }
   0x2   :  { %54 = vmatpush.bf16.msra.mxu0 %v196_v0  ;;  %v21_v3 = vld [vmem:[%s286_s0] sm:$0xff]  ;;  %v22_v4 = vld [vmem:[%s286_s0 + $0x8] sm:$0xff]  ;;  %133 = vmatpush.bf16.msra.mxu1 %v204_v2  ;;  %v203_v5 = vld [vmem:[%s287_s3 + $0x30] sm:$0xff] }
   0x3   :  { %v23_v6 = vpack.c.bf16 %v22_v4, %v21_v3  ;;  %v202_v7 = vld [vmem:[%s287_s3 + $0x28] sm:$0xff]  ;;  %v201_v8 = vld [vmem:[%s287_s3 + $0x20] sm:$0xff]  ;;  %v200_v9 = vld [vmem:[%s287_s3 + $0x18] sm:$0xff] }
   0x4   :  { %v199_v10 = vld [vmem:[%s287_s3 + $0x10] sm:$0xff]  ;;  %v198_v11 = vld [vmem:[%s287_s3 + $0x8] sm:$0xff]  ;;  %v197_v12 = vld [vmem:[%s287_s3] sm:$0xff] }
   0x5   :  { %v205_v14 = vld [vmem:[%s288_s2] ss:$0 sm:$0xff] }
   0x6   :  { %55 = vmatpush.bf16.msra.mxu0 %v195_v1  ;;  %134 = vmatpush.bf16.msra.mxu1 %v203_v5  ;;  %v206_v21 = vld [vmem:[%s289_s4] ss:$0 sm:$0xff] }
   0x9   :  { %162 = vmatmul.msk.bf16.vlgmr.msra.gmra.mxu0 %vm44_vm0, %v23_v6 }
   0xa   :  { %135 = vmatpush.bf16.msra.mxu1 %v202_v7 }
   0xe   :  { %136 = vmatpush.bf16.msra.mxu1 %v201_v8 }
  0x12   :  { %137 = vmatpush.bf16.msra.mxu1 %v200_v9 }
  0x16   :  { %138 = vmatpush.bf16.msra.mxu1 %v199_v10 }
  0x1a   :  { %139 = vmatpush.bf16.msra.mxu1 %v198_v11 }
  0x1e   :  { %140 = vmatpush.bf16.msra.mxu1 %v197_v12 }
  0x86   :  { %v57_v13 = vpop.f32.mrf.mxu0 }
  0x87   :  { %v58_v15 = vadd.f32 %v205_v14, %v57_v13 }
  0x89   :  { %v62_v18 = vmax.f32 %v58_v15, 0.0 }
  0x8e   :  { %v59_v16 = vpop.f32.mrf.mxu0 }
  0x8f   :  { %v60_v17 = vadd.f32 %v205_v14, %v59_v16 }
  0x91   :  { %v63_v19 = vmax.f32 %v60_v17, 0.0 }
  0x93   :  { %v64_v20 = vpack.c.bf16 %v63_v19, %v62_v18 }
  0x95   :  { %141 = vmatmul.bf16.vlgmr.msra.gmra.mxu1 %v64_v20 }
 0x112   :  { %v142_v22 = vpop.f32.mrf.mxu1 }
 0x113   :  { %v143_v23 = vadd.f32 %v206_v21, %v142_v22 }
 0x115   :  { %148 = vst.msk [vmem:[%s290_s5] sm:$0xff] %vm147_vm1, %v143_v23 }
 0x11a   :  { %v144_v24 = vpop.f32.mrf.mxu1 }
 0x11b   :  { %v145_v25 = vadd.f32 %v206_v21, %v144_v24 }
 0x11d   :  { %149 = vst.msk [vmem:[%s290_s5 + $0x8] sm:$0xff] %vm147_vm1, %v145_v25 }

</bundles_post_ra>
